<compile_context>
chip_gen: v7x
topology: tpu7x:2x2x1
jax: 0.10.0
libtpu: 0.0.40
codegen_flags: <defaults>
</compile_context>

<pallas_src>
import functools

import jax
import jax.numpy as jnp
from jax.experimental import pallas as pl
from jax.experimental.pallas import tpu as pltpu

EPS = 1e-6      # matches the module default: Dice(num_features, eps=1e-06)
LANE = 128


def dice_kernel(alpha_ref, x_ref, gamma_ref, beta_ref, o_ref):
    # x tile: (N, TILE_C). Per-feature batch statistics in one pass, then a
    # fused normalize + sigmoid-gate epilogue.
    x = x_ref[...].astype(jnp.float32)                       # (N, TILE_C)
    n = x.shape[0]
    inv_n = 1.0 / n

    s1 = jnp.sum(x, axis=0, keepdims=True) * inv_n            # mean, (1, TILE_C)
    s2 = jnp.sum(x * x, axis=0, keepdims=True) * inv_n        # E[x^2]
    var = jnp.maximum(s2 - s1 * s1, 0.0)                      # biased variance
    inv_std = jax.lax.rsqrt(var + EPS)

    # Fold BN affine into per-feature scale/shift (O(C) row work, O(N*C) FMA).
    scale = gamma_ref[...].astype(jnp.float32) * inv_std       # (1, TILE_C)
    shift = beta_ref[...].astype(jnp.float32) - s1 * scale     # (1, TILE_C)

    x_norm = x * scale + shift
    px = jax.nn.sigmoid(x_norm)                                # EUP

    alpha = alpha_ref[0]
    # y = px*x + (1-px)*alpha*x  ==  x * (alpha + (1 - alpha) * px)
    y = x * (alpha + (1.0 - alpha) * px)
    o_ref[...] = y.astype(o_ref.dtype)


def _pick_tile_c(n, c_pad, itemsize):
    """Largest multiple-of-128 tile dividing c_pad that fits the VMEM budget."""
    # Budget: 2 double-buffered input tiles + 2 double-buffered output tiles.
    # Keep headroom below the 32 MiB default scope (valid on v5e/v6e/v7x).
    budget_bytes = 24 * 1024 * 1024
    max_tile = budget_bytes // max(1, 4 * n * itemsize)
    for cand in (1024, 512, 256, 128):
        if cand <= max_tile and c_pad % cand == 0:
            return cand
    return min(LANE, c_pad)


@functools.partial(jax.jit, static_argnames=("tile_c",))
def dice(x, gamma, beta, alpha, tile_c=None):
    n, c = x.shape

    # Lane-dense layout: pad features up to a multiple of 128 so stores are
    # unmasked full-lane vst. Zero-padded columns produce finite garbage that
    # is sliced off below (var=0 is guarded by eps).
    c_pad = pl.cdiv(c, LANE) * LANE
    if c_pad != c:
        pad = c_pad - c
        x_p = jnp.pad(x, ((0, 0), (0, pad)))
        gamma_p = jnp.pad(gamma, ((0, 0), (0, pad)))
        beta_p = jnp.pad(beta, ((0, 0), (0, pad)))
    else:
        x_p, gamma_p, beta_p = x, gamma, beta

    if tile_c is None:
        tile_c = _pick_tile_c(n, c_pad, x.dtype.itemsize)

    grid = (c_pad // tile_c,)

    out = pl.pallas_call(
        dice_kernel,
        out_shape=jax.ShapeDtypeStruct((n, c_pad), x.dtype),
        grid=grid,
        in_specs=[
            pl.BlockSpec(memory_space=pltpu.SMEM),          # alpha scalar, (1,)
            pl.BlockSpec((n, tile_c), lambda j: (0, j)),    # x tile
            pl.BlockSpec((1, tile_c), lambda j: (0, j)),    # gamma (bn weight)
            pl.BlockSpec((1, tile_c), lambda j: (0, j)),    # beta  (bn bias)
        ],
        out_specs=pl.BlockSpec((n, tile_c), lambda j: (0, j)),
        compiler_params=pltpu.CompilerParams(
            dimension_semantics=("parallel",),              # megacore on v7x
            vmem_limit_bytes=64 * 1024 * 1024,
        ),
    )(alpha, x_p, gamma_p, beta_p)

    if c_pad != c:
        out = out[:, :c]
    return out


def dice_ref(x, gamma, beta, alpha):
    xf = x.astype(jnp.float32)
    mean = jnp.mean(xf, axis=0, keepdims=True)
    var = jnp.mean((xf - mean) ** 2, axis=0, keepdims=True)
    x_norm = (xf - mean) / jnp.sqrt(var + EPS) * gamma + beta
    px = jax.nn.sigmoid(x_norm)
    return (px * xf + (1.0 - px) * alpha[0] * xf).astype(x.dtype)


if __name__ == "__main__":
    key = jax.random.PRNGKey(0)
    kx, kg, kb, ka = jax.random.split(key, 4)

    N, C = 8, 32  # batch, num_features (BatchNorm1d 2-D convention)

    x = jax.random.normal(kx, (N, C), dtype=jnp.float32)
    # Parameters (shapes per Dice.__init__): bn.weight (C,), bn.bias (C,), alpha (1,).
    # Deterministic non-trivial values so the full compute path is exercised.
    gamma = 1.0 + 0.1 * jax.random.normal(kg, (1, C), dtype=jnp.float32)
    beta = 0.1 * jax.random.normal(kb, (1, C), dtype=jnp.float32)
    alpha = 0.25 * jnp.ones((1,), dtype=jnp.float32)

    out = dice(x, gamma, beta, alpha)
    out = jax.block_until_ready(out)

    ref = dice_ref(x, gamma, beta, alpha)
    assert jnp.allclose(out, ref, atol=1e-5, rtol=1e-5), "mismatch vs reference"

    print("KERNEL_OK")
</pallas_src>

<mosaic_0001>
module attributes {stable_mosaic.version = 11 : i64} {
  func.func @dice_kernel(%arg0: i32, %arg1: memref<1xf32, #tpu.memory_space<smem>>, %arg2: memref<8x128xf32, #tpu.memory_space<vmem>>, %arg3: memref<1x128xf32, #tpu.memory_space<vmem>>, %arg4: memref<1x128xf32, #tpu.memory_space<vmem>>, %arg5: memref<8x128xf32, #tpu.memory_space<vmem>>) attributes {dimension_semantics = [#tpu.dimension_semantics<parallel>], iteration_bounds = array<i64: 1>, scalar_prefetch = 0 : i64, scratch_operands = 0 : i64, tpu.core_type = #tpu.core_type<tc>, window_params = [{transform_indices = @transform_0, window_bounds = array<i64: 1>}, {transform_indices = @transform_1, window_bounds = array<i64: 8, 128>}, {transform_indices = @transform_2, window_bounds = array<i64: 1, 128>}, {transform_indices = @transform_3, window_bounds = array<i64: 1, 128>}, {transform_indices = @transform_4, window_bounds = array<i64: 8, 128>}]} {
    %c0 = arith.constant 0 : index
    %c0_0 = arith.constant 0 : index
    %0 = vector.load %arg2[%c0, %c0_0] : memref<8x128xf32, #tpu.memory_space<vmem>>, vector<8x128xf32>
    %cst = arith.constant dense<0.000000e+00> : vector<128xf32>
    %1 = vector.multi_reduction <add>, %0, %cst [0] : vector<8x128xf32> to vector<128xf32>
    %2 = vector.shape_cast %1 : vector<128xf32> to vector<1x128xf32>
    %cst_1 = arith.constant 1.250000e-01 : f32
    %3 = vector.broadcast %cst_1 : f32 to vector<1x128xf32>
    %4 = arith.mulf %2, %3 : vector<1x128xf32>
    %5 = arith.mulf %0, %0 : vector<8x128xf32>
    %cst_2 = arith.constant dense<0.000000e+00> : vector<128xf32>
    %6 = vector.multi_reduction <add>, %5, %cst_2 [0] : vector<8x128xf32> to vector<128xf32>
    %7 = vector.shape_cast %6 : vector<128xf32> to vector<1x128xf32>
    %cst_3 = arith.constant 1.250000e-01 : f32
    %8 = vector.broadcast %cst_3 : f32 to vector<1x128xf32>
    %9 = arith.mulf %7, %8 : vector<1x128xf32>
    %10 = arith.mulf %4, %4 : vector<1x128xf32>
    %11 = arith.subf %9, %10 : vector<1x128xf32>
    %cst_4 = arith.constant 0.000000e+00 : f32
    %12 = vector.broadcast %cst_4 : f32 to vector<1x128xf32>
    %13 = arith.maximumf %11, %12 : vector<1x128xf32>
    %cst_5 = arith.constant 9.99999997E-7 : f32
    %14 = vector.broadcast %cst_5 : f32 to vector<1x128xf32>
    %15 = arith.addf %13, %14 : vector<1x128xf32>
    %16 = math.rsqrt %15 : vector<1x128xf32>
    %c0_6 = arith.constant 0 : index
    %c0_7 = arith.constant 0 : index
    %17 = vector.load %arg3[%c0_6, %c0_7] : memref<1x128xf32, #tpu.memory_space<vmem>>, vector<1x128xf32>
    %18 = arith.mulf %17, %16 : vector<1x128xf32>
    %c0_8 = arith.constant 0 : index
    %c0_9 = arith.constant 0 : index
    %19 = vector.load %arg4[%c0_8, %c0_9] : memref<1x128xf32, #tpu.memory_space<vmem>>, vector<1x128xf32>
    %20 = arith.mulf %4, %18 : vector<1x128xf32>
    %21 = arith.subf %19, %20 : vector<1x128xf32>
    %22 = vector.broadcast %18 : vector<1x128xf32> to vector<8x128xf32>
    %23 = arith.mulf %0, %22 : vector<8x128xf32>
    %24 = vector.broadcast %21 : vector<1x128xf32> to vector<8x128xf32>
    %25 = arith.addf %23, %24 : vector<8x128xf32>
    %26 = arith.negf %25 : vector<8x128xf32>
    %27 = math.exp %26 : vector<8x128xf32>
    %cst_10 = arith.constant 1.000000e+00 : f32
    %28 = vector.broadcast %cst_10 : f32 to vector<8x128xf32>
    %29 = arith.addf %28, %27 : vector<8x128xf32>
    %30 = arith.divf %28, %29 : vector<8x128xf32>
    %c0_11 = arith.constant 0 : index
    %31 = memref.load %arg1[%c0_11] : memref<1xf32, #tpu.memory_space<smem>>
    %cst_12 = arith.constant 1.000000e+00 : f32
    %32 = arith.subf %cst_12, %31 : f32
    %33 = vector.broadcast %32 : f32 to vector<8x128xf32>
    %34 = arith.mulf %33, %30 : vector<8x128xf32>
    %35 = vector.broadcast %31 : f32 to vector<8x128xf32>
    %36 = arith.addf %35, %34 : vector<8x128xf32>
    %37 = arith.mulf %0, %36 : vector<8x128xf32>
    %c0_13 = arith.constant 0 : index
    %c0_14 = arith.constant 0 : index
    %38 = vector.load %arg5[%c0_13, %c0_14] : memref<8x128xf32, #tpu.memory_space<vmem>>, vector<8x128xf32>
    tpu.vector_store %arg5[%c0_13, %c0_14], %37 {strides = array<i32>} : memref<8x128xf32, #tpu.memory_space<vmem>>, vector<8x128xf32>,
    return
  }
  func.func @transform_0(%arg0: i32) -> i32 {
    %c0_i32 = arith.constant 0 : i32
    %c0_i32_0 = arith.constant 0 : i32
    return %c0_i32 : i32
  }
  func.func @transform_1(%arg0: i32) -> (i32, i32) {
    %c0_i32 = arith.constant 0 : i32
    %c0_i32_0 = arith.constant 0 : i32
    return %c0_i32, %arg0 : i32, i32
  }
  func.func @transform_2(%arg0: i32) -> (i32, i32) {
    %c0_i32 = arith.constant 0 : i32
    %c0_i32_0 = arith.constant 0 : i32
    return %c0_i32, %arg0 : i32, i32
  }
  func.func @transform_3(%arg0: i32) -> (i32, i32) {
    %c0_i32 = arith.constant 0 : i32
    %c0_i32_0 = arith.constant 0 : i32
    return %c0_i32, %arg0 : i32, i32
  }
  func.func @transform_4(%arg0: i32) -> (i32, i32) {
    %c0_i32 = arith.constant 0 : i32
    %c0_i32_0 = arith.constant 0 : i32
    return %c0_i32, %arg0 : i32, i32
  }
}

</mosaic_0001>

<bundles_post_ra>
// kernel: dice.1
= control target key start
LH: loop header
LB: loop body
LE: loop exit
PB: predicated region body
PF: predicated region fallthrough
CT: control target
= control target key end

     0   :  { %10 = vsyncpa [#allocation4], 0  ;;  %s312_s0 = inlined_call_operand.<no memory space> [shape: f32[1], index: 0, kind: input, shape index: {}]   ;;  %s313_s1 = inlined_call_operand.hbm [shape: f32[8,128], index: 1, kind: input, shape index: {}]   ;;  %s314_s2 = inlined_call_operand.hbm [shape: f32[1,128], index: 2, kind: input, shape index: {}]   ;;  %s315_s3 = inlined_call_operand.hbm [shape: f32[1,128], index: 3, kind: input, shape index: {}]   ;;  %s316_s4 = inlined_call_operand.hbm [shape: f32[8,128], index: 4, kind: output, shape index: {}]  }
   0x1   :  { %11 = vsyncpa [#allocation7], 0 }
   0x2   :  { %12 = vsyncpa [#allocation5], 0  ;;  %s229_s15 = smov [#allocation6]   ;;  %s230_s17 = smov [#allocation3]  }
   0x3   :  { %s31_s16 = sshll.u32 %s229_s15, 4  ;;  %s21_s18 = sshll.u32 %s230_s17, 4  ;;  %s32_s16 = int_to_ptr.vmem [resolvable:$true] %s31_s16  ;;  %s22_s18 = int_to_ptr.vmem [resolvable:$true] %s21_s18 }
   0x4   :  { %s135_s21 = scalar_lea.hbm %s314_s2, 16 }
   0x5   :  { %p136_p0 = scmp.ne.s32.totalorder %s314_s2, %s135_s21  ;;  %p139_p1 = scmp.lt.u32.totalorder %s135_s21, %s314_s2 }
   0x7   :  { %p141_p2 = pnand %p139_p1, %p136_p0 }
   0x9   :  { %144 = shalt.err (!%p141_p2)
}
   0xa   :  { %s145_s26 = scalar_lea.vmem %s32_s16, 16  ;;  %s149_s27 = scalar_lea.vmem %s32_s16, 32 }
   0xb   :  { %p146_p3 = scmp.ne.s32.totalorder %s32_s16, %s145_s26  ;;  %p150_p4 = scmp.lt.s32.totalorder %s32_s16, %s32_s16 }
   0xc   :  { %p151_p5 = scmp.lt.s32.totalorder %s149_s27, %s145_s26 }
   0xe   :  { %p152_p6 = por %p151_p5, %p150_p4 }
  0x10   :  { %p153_p7 = pnand %p152_p6, %p146_p3 }
  0x12   :  { %156 = shalt.err (!%p153_p7)
}
  0x13   :  { %34 = dma.hbm_to_vmem [thread:$0]  %s314_s2, 16, %s32_s16, [#allocation7]  }
  0x14   :  { %s157_s6 = scalar_lea.hbm %s313_s1, 128 }
  0x15   :  { %p158_p8 = scmp.ne.s32.totalorder %s313_s1, %s157_s6  ;;  %p161_p9 = scmp.lt.u32.totalorder %s157_s6, %s313_s1 }
  0x17   :  { %p163_p10 = pnand %p161_p9, %p158_p8 }
  0x19   :  { %166 = shalt.err (!%p163_p10)
}
  0x1a   :  { %s167_s11 = scalar_lea.vmem %s22_s18, 128  ;;  %p172_p12 = scmp.lt.s32.totalorder %s22_s18, %s22_s18 }
  0x1b   :  { %p168_p11 = scmp.ne.s32.totalorder %s22_s18, %s167_s11  ;;  %p173_p13 = scmp.lt.s32.totalorder %s167_s11, %s167_s11 }
  0x1d   :  { %p174_p0 = por %p173_p13, %p172_p12 }
  0x1f   :  { %p175_p1 = pnand %p174_p0, %p168_p11 }
  0x21   :  { %178 = shalt.err (!%p175_p1)
}
  0x22   :  { %24 = dma.hbm_to_vmem [thread:$0]  %s313_s1, 128, %s22_s18, [#allocation4]  }
  0x23   :  { %s231_s13 = smov [#allocation8]   ;;  %s179_s17 = scalar_lea.hbm %s315_s3, 16 }
  0x24   :  { %s41_s14 = sshll.u32 %s231_s13, 4  ;;  %p180_p2 = scmp.ne.s32.totalorder %s315_s3, %s179_s17  ;;  %s42_s14 = int_to_ptr.vmem [resolvable:$true] %s41_s14 }
  0x25   :  { %p183_p3 = scmp.lt.u32.totalorder %s179_s17, %s315_s3 }
  0x27   :  { %p185_p4 = pnand %p183_p3, %p180_p2 }
  0x29   :  { %188 = shalt.err (!%p185_p4)
}
  0x2a   :  { %s189_s23 = scalar_lea.vmem %s42_s14, 16  ;;  %s193_s1 = scalar_lea.vmem %s42_s14, 32 }
  0x2b   :  { %p190_p5 = scmp.ne.s32.totalorder %s42_s14, %s189_s23  ;;  %p194_p6 = scmp.lt.s32.totalorder %s42_s14, %s42_s14 }
  0x2c   :  { %p195_p7 = scmp.lt.s32.totalorder %s193_s1, %s189_s23 }
  0x2e   :  { %p196_p8 = por %p195_p7, %p194_p6 }
  0x30   :  { %p197_p9 = pnand %p196_p8, %p190_p5 }
  0x32   :  { %200 = shalt.err (!%p197_p9)
}
  0x33   :  { %44 = dma.hbm_to_vmem [thread:$0]  %s315_s3, 16, %s42_s14, [#allocation7]  }
  0x34   :  { %223 = dma.done.wait [#allocation4], 128  }
  0x35   :  { %224 = vsyncadd [#allocation4], 4294967168 }
  0x36   :  { %225 = dma.done.wait [#allocation7], 32  }
  0x37   :  { %226 = vsyncadd [#allocation7], 4294967264  ;;  %v54_v0 = vld [vmem:[#allocation3] sm:$0xff]  ;;  %v81_v20 = vlaneseq  ;;  %v75_v22 = vld [vmem:[#allocation6] sm:$0x1]  ;;  %s101_s26 = ssub.f32 1.0, %s312_s0  ;;  %v104_v38 = vstv %s312_s0 }
  0x38   :  { %v55_v1 = vrot.slane %v54_v0, 4  ;;  %v62_v2 = vmul.f32 %v54_v0, %v54_v0  ;;  %v77_v26 = vld [vmem:[#allocation8] sm:$0x1]  ;;  %s232_s29 = smov [#allocation9]  }
  0x39   :  { %v82_v21 = vshrl.u32 %v81_v20, 7  ;;  %v102_v36 = vstv %s101_s26  ;;  %s114_s30 = sshll.u32 %s232_s29, 4  ;;  %s115_s30 = int_to_ptr.vmem [resolvable:$true] %s114_s30 }
  0x3a   :  { %v56_v3 = vadd.f32 %v55_v1, %v54_v0  ;;  %v63_v4 = vrot.slane %v62_v2, 4  ;;  %s201_s5 = scalar_lea.vmem %s115_s30, 128  ;;  %p206_p11 = scmp.lt.s32.totalorder %s115_s30, %s115_s30 }
  0x3b   :  { %v83_v23 = vsub.s32 0, %v82_v21  ;;  %p202_p10 = scmp.ne.s32.totalorder %s115_s30, %s201_s5  ;;  %p207_p12 = scmp.lt.s32.totalorder %s201_s5, %s201_s5 }
  0x3c   :  { %v57_v5 = vrot.slane %v56_v3, 2  ;;  %v64_v6 = vadd.f32 %v63_v4, %v62_v2 }
  0x3d   :  { %p208_p13 = por %p207_p12, %p206_p11 }
  0x3e   :  { %v58_v7 = vadd.f32 %v57_v5, %v56_v3  ;;  %v65_v8 = vrot.slane %v64_v6, 2 }
  0x3f   :  { %p209_p0 = pnand %p208_p13, %p202_p10 }
  0x40   :  { %v59_v9 = vrot.slane %v58_v7, 1  ;;  %v66_v10 = vadd.f32 %v65_v8, %v64_v6 }
  0x42   :  { %v60_v11 = vadd.f32 %v59_v9, %v58_v7  ;;  %v67_v12 = vrot.slane %v66_v10, 1 }
  0x44   :  { %v61_v13 = vmul.f32 0.125, %v60_v11  ;;  %v68_v14 = vadd.f32 %v67_v12, %v66_v10 }
  0x46   :  { %v69_v15 = vmul.f32 0.125, %v68_v14  ;;  %v70_v16 = vmul.f32 %v61_v13, %v61_v13 }
  0x48   :  { %v71_v17 = vsub.f32 %v69_v15, %v70_v16 }
  0x4a   :  { %v72_v18 = vmax.f32 %v71_v17, 0.0 }
  0x4c   :  { %v73_v19 = vadd.f32 1e-06, %v72_v18 }
  0x4e   :  { %129 = vrsqrt.f32 %v73_v19 }
  0x58   :  { %v130_v24 = vpop.eup %129 }
  0x59   :  { %v76_v25 = vmul.f32 %v130_v24, %v75_v22 }
  0x5b   :  { %v78_v27 = vmul.f32 %v76_v25, %v61_v13  ;;  %v84_v28 = vrot.slane %v76_v25, %v83_v23 }
  0x5d   :  { %v79_v29 = vsub.f32 %v77_v26, %v78_v27  ;;  %v86_v30 = vmul.f32 %v84_v28, %v54_v0 }
  0x5f   :  { %v91_v31 = vrot.slane %v79_v29, %v83_v23 }
  0x61   :  { %v93_v32 = vadd.f32 %v91_v31, %v86_v30 }
  0x63   :  { %v124_v33 = vmul.f32 -1.442695, %v93_v32 }
  0x65   :  { %131 = vpow2.f32 %v124_v33 }
  0x6f   :  { %v132_v34 = vpop.eup %131 }
  0x70   :  { %v97_v35 = vadd.f32 1.0, %v132_v34 }
  0x72   :  { %133 = vrcp.f32 %v97_v35 }
  0x7c   :  { %v134_v37 = vpop.eup %133 }
  0x7d   :  { %v103_v39 = vmul.f32 %v134_v37, %v102_v36 }
  0x7f   :  { %v105_v40 = vadd.f32 %v104_v38, %v103_v39 }
  0x81   :  { %v106_v41 = vmul.f32 %v105_v40, %v54_v0 }
  0x83   :  { %107 = vst [vmem:[#allocation9] sm:$0xff] %v106_v41 }
  0x84   :  { %212 = shalt.err (!%p209_p0)
}
  0x85   :  { %s213_s8 = scalar_lea.hbm %s316_s4, 128 }
  0x86   :  { %p214_p1 = scmp.ne.s32.totalorder %s316_s4, %s213_s8  ;;  %p217_p2 = scmp.lt.u32.totalorder %s213_s8, %s316_s4 }
  0x88   :  { %p219_p3 = pnand %p217_p2, %p214_p1 }
  0x8a   :  { %222 = shalt.err (!%p219_p3)
}
  0x8b   :  { %117 = dma.vmem_to_hbm [thread:$0]  %s115_s30, 128, %s316_s4, [#allocation5]  }
  0x8c   :  { %227 = dma.done.wait [#allocation5], 128  }
  0x8d   :  { %228 = vsyncadd [#allocation5], 4294967168 }
  0x8e   :  { %121 = vsyncpa [#allocation4], 1 }
  0x8f   :  { %122 = vsyncpa [#allocation7], 1 }
  0x90   :  { %123 = vsyncpa [#allocation5], 1 }

</bundles_post_ra>
